<compile_context>
chip_gen: v7x
topology: tpu7x:2x2x1
jax: 0.10.0
libtpu: 0.0.40
codegen_flags: <defaults>
</compile_context>

<pallas_src>
import jax
import jax.numpy as jnp
from jax import lax
from jax.experimental import pallas as pl
from jax.experimental.pallas import tpu as pltpu

_MASK_VALUE = -1000000.0  # matches the PyTorch reference's sequence_mask fill


def _round_up(x, m):
    return ((x + m - 1) // m) * m


def _make_kernel(TQ, TK, Kp, NKC, H, HC):
    def kernel(vl_ref,                    # (B,) int32 scalar-prefetch (SMEM)
               qp_ref,                    # (TQ, H)      query projection (compute dtype)
               kpT_ref,                   # (NKC, H, TK) key projection, lane-dense chunks
               v_ref,                     # (Kp, Dv)     values (f32)
               wv_ref,                    # (H, 1)       w_v column (f32)
               out_ref,                   # (TQ, Dv)     f32 output
               attn_ref,                  # (TQ, Kp)     f32 attention weights
               scores_ref):               # VMEM scratch (NKC, TQ, TK) f32
        b = pl.program_id(0)
        vl = vl_ref[b]                    # valid length for this batch element

        # Hoisted out of the chunk loop (broadcast/relayout is not CSE'd).
        qp_t = qp_ref[...][:, :, None]                      # (TQ, H, 1), H on sublanes
        wv_t = wv_ref[...].astype(qp_t.dtype)[None, :, :]   # (1, H, 1)

        n_valid = jnp.minimum(jnp.maximum(vl, 0), Kp)
        n_chunks = pl.cdiv(n_valid, TK)   # dynamic; fully-masked K chunks are skipped

        @pl.loop(0, n_chunks)
        def _(c):
            kc = kpT_ref[c]                                  # (H, TK): TK (128) on lanes
            acc = jnp.zeros((TQ, TK), jnp.float32)
            # Sub-chunk H so the (TQ, HC, TK) tanh intermediate stays small.
            for h0 in range(0, H, HC):
                # features = tanh(q_proj[q,h] + k_proj[h,k]) -> (TQ, HC, TK), lane-dense
                feat = jnp.tanh(qp_t[:, h0:h0 + HC, :] + kc[None, h0:h0 + HC, :])
                prod = feat * wv_t[:, h0:h0 + HC, :]
                acc = acc + jnp.sum(prod.astype(jnp.float32), axis=1)
            scores_ref[c] = acc            # dynamic LEADING-index store (no lane ds)

        # Masked softmax over K (chunk axis 0 + lane axis 2).  Chunks the loop
        # skipped hold stale data that the mask below overrides (no init needed).
        s = scores_ref[...]                                  # (NKC, TQ, TK)
        kidx = (lax.broadcasted_iota(jnp.int32, (NKC, TQ, TK), 0) * TK
                + lax.broadcasted_iota(jnp.int32, (NKC, TQ, TK), 2))
        masked = jnp.where(kidx < vl, s, jnp.float32(_MASK_VALUE))
        m = jnp.max(jnp.max(masked, axis=2, keepdims=True), axis=0, keepdims=True)
        e = jnp.exp(masked - m)                              # (NKC, TQ, TK)
        denom = jnp.sum(jnp.sum(e, axis=2, keepdims=True), axis=0, keepdims=True)
        inv = pl.reciprocal(denom, approx=True)              # EUP fast path
        inv = inv * (2.0 - denom * inv)                      # 1 Newton step -> f32 accuracy
        attn3 = e * inv                                      # (NKC, TQ, TK)

        # Q-major attention weights via static lane-aligned chunk stores
        # (no per-tile transpose).
        # TODO(synk): dropout on attention weights is identity in eval mode;
        # training-mode dropout not implemented.
        for c in range(NKC):
            attn_ref[:, c * TK:(c + 1) * TK] = attn3[c].astype(attn_ref.dtype)

        # output = attn @ values on the MXU.  Masked/padded columns carry ~0
        # weight (and padded values are 0), so contracting over Kp is exact.
        out_ref[...] = jnp.dot(attn_ref[...], v_ref[...],
                               preferred_element_type=jnp.float32
                               ).astype(out_ref.dtype)

    return kernel


def additive_attention(queries, keys, values, valid_lens, W_q, W_k, w_v,
                       *, compute_dtype=jnp.float32):
    """queries (B,Q,Dq), keys (B,K,Dk), values (B,K,Dv), valid_lens (B,) or None,
    W_q (Dq,H), W_k (Dk,H), w_v (1,H)  (weights transposed vs nn.Linear.weight).
    Returns (output (B,Q,Dv), attention_weights (B,Q,K)).
    compute_dtype=jnp.bfloat16 enables the bf16 tanh path (v6e/v7x); softmax and
    all accumulations stay in f32."""
    B, Q, Dq = queries.shape
    _, K, Dk = keys.shape
    _, _, Dv = values.shape
    H = W_q.shape[1]

    TQ = Q if Q <= 128 else 128
    TK = K if K < 128 else 128
    Qp = _round_up(Q, TQ)
    Kp = _round_up(K, TK)
    NKC = Kp // TK
    HC = 16 if H % 16 == 0 else (8 if H % 8 == 0 else H)

    # Projections hoisted to XLA batched matmuls (full-MXU efficiency).  This
    # also removes the per-batch kproj scratch reuse, so BOTH grid axes can be
    # "parallel" (megacore can shard over Q tiles when B is small or odd).
    q_proj = jnp.einsum('bqd,dh->bqh', queries, W_q)          # (B, Q, H) f32
    k_projT = jnp.einsum('bkd,dh->bhk', keys, W_k)            # (B, H, K) f32

    if Qp != Q:
        q_proj = jnp.pad(q_proj, ((0, 0), (0, Qp - Q), (0, 0)))
    if Kp != K:
        k_projT = jnp.pad(k_projT, ((0, 0), (0, 0), (0, Kp - K)))
        values = jnp.pad(values, ((0, 0), (0, Kp - K), (0, 0)))

    # Pre-chunk the key projection so the kernel indexes chunks on a LEADING
    # axis (no dynamic lane-offset slicing): (B, NKC, H, TK), TK on lanes.
    k_projT = k_projT.reshape(B, H, NKC, TK).transpose(0, 2, 1, 3)

    # bf16 path: only the add+tanh+w_v product consumes bf16 operands.
    q_proj = q_proj.astype(compute_dtype)
    k_projT = k_projT.astype(compute_dtype)

    w_v_col = jnp.asarray(w_v, jnp.float32).reshape(H, 1)

    if valid_lens is None:
        valid_lens = jnp.full((B,), K, dtype=jnp.int32)   # mask nothing -> plain softmax
    # TODO(synk): 2-D per-query valid_lens (the other masked_softmax branch) not supported.
    valid_lens = valid_lens.astype(jnp.int32)

    grid = (B, Qp // TQ)

    grid_spec = pltpu.PrefetchScalarGridSpec(
        num_scalar_prefetch=1,
        grid=grid,
        in_specs=[
            pl.BlockSpec((None, TQ, H), lambda b, qt, vl: (b, qt, 0)),         # q_proj
            pl.BlockSpec((None, NKC, H, TK), lambda b, qt, vl: (b, 0, 0, 0)),  # k_projT
            pl.BlockSpec((None, Kp, Dv), lambda b, qt, vl: (b, 0, 0)),         # values
            pl.BlockSpec((H, 1), lambda b, qt, vl: (0, 0)),                    # w_v
        ],
        out_specs=[
            pl.BlockSpec((None, TQ, Dv), lambda b, qt, vl: (b, qt, 0)),        # output
            pl.BlockSpec((None, TQ, Kp), lambda b, qt, vl: (b, qt, 0)),        # attn
        ],
        scratch_shapes=[
            pltpu.VMEM((NKC, TQ, TK), jnp.float32),   # raw scores, chunk-major
        ],
    )

    out, attn = pl.pallas_call(
        _make_kernel(TQ, TK, Kp, NKC, H, HC),
        grid_spec=grid_spec,
        out_shape=(
            jax.ShapeDtypeStruct((B, Qp, Dv), jnp.float32),
            jax.ShapeDtypeStruct((B, Qp, Kp), jnp.float32),
        ),
        compiler_params=pltpu.CompilerParams(
            # Both axes independent now that k_proj is hoisted out of the kernel.
            dimension_semantics=("parallel", "parallel"),
            vmem_limit_bytes=48 * 1024 * 1024,   # fits every generation (<= v7x 64 MiB)
        ),
    )(valid_lens, q_proj, k_projT, values, w_v_col)

    return out[:, :Q, :], attn[:, :Q, :K]


def _reference(queries, keys, values, valid_lens, W_q, W_k, w_v):
    q_proj = queries @ W_q                        # (B,Q,H)
    k_proj = keys @ W_k                           # (B,K,H)
    feat = jnp.tanh(q_proj[:, :, None, :] + k_proj[:, None, :, :])
    scores = jnp.einsum("bqkh,h->bqk", feat, w_v[0])
    if valid_lens is None:
        attn = jax.nn.softmax(scores, axis=-1)
    else:
        kidx = jnp.arange(scores.shape[-1])[None, None, :]
        mask = kidx < valid_lens[:, None, None]
        masked = jnp.where(mask, scores, _MASK_VALUE)
        attn = jax.nn.softmax(masked, axis=-1)
    return jnp.einsum("bqk,bkd->bqd", attn, values), attn


def _run_case(key, B, Q, K, Dq, Dk, Dv, H, valid_lens,
              compute_dtype=jnp.float32, atol=2e-4, rtol=2e-3):
    kq, kk, kv, kwq, kwk, kwv = jax.random.split(key, 6)
    queries = jax.random.normal(kq, (B, Q, Dq), dtype=jnp.float32)
    keys_ = jax.random.normal(kk, (B, K, Dk), dtype=jnp.float32)
    values = jax.random.normal(kv, (B, K, Dv), dtype=jnp.float32)
    W_q = jax.random.normal(kwq, (Dq, H), dtype=jnp.float32) * 0.1
    W_k = jax.random.normal(kwk, (Dk, H), dtype=jnp.float32) * 0.1
    w_v = jax.random.normal(kwv, (1, H), dtype=jnp.float32) * 0.1
    if valid_lens is not None:
        valid_lens = jnp.asarray(valid_lens, dtype=jnp.int32)

    out, attn = additive_attention(queries, keys_, values, valid_lens,
                                   W_q, W_k, w_v, compute_dtype=compute_dtype)
    out = jax.block_until_ready(out)
    attn = jax.block_until_ready(attn)

    ref_out, ref_attn = _reference(queries, keys_, values, valid_lens,
                                   W_q, W_k, w_v)
    assert out.shape == ref_out.shape and attn.shape == ref_attn.shape
    assert jnp.allclose(out, ref_out, atol=atol, rtol=rtol), \
        float(jnp.max(jnp.abs(out - ref_out)))
    assert jnp.allclose(attn, ref_attn, atol=atol, rtol=rtol), \
        float(jnp.max(jnp.abs(attn - ref_attn)))


if __name__ == "__main__":
    root = jax.random.PRNGKey(0)
    k1, k2, k3, k4 = jax.random.split(root, 4)

    # Small shapes matching the module (single Q tile, single K chunk).
    _run_case(k1, B=2, Q=8, K=8, Dq=16, Dk=16, Dv=16, H=32, valid_lens=[3, 6])

    # valid_lens=None branch (plain softmax over K).
    _run_case(k2, B=2, Q=8, K=8, Dq=16, Dk=16, Dv=16, H=32, valid_lens=None)

    # Ragged case: Q tiling + padding, K chunking + padding, and masked-K-chunk
    # skipping (valid_len=100 skips the second 128-wide chunk entirely).
    _run_case(k3, B=2, Q=160, K=192, Dq=32, Dk=32, Dv=32, H=64,
              valid_lens=[100, 192])

    # bf16 tanh path (v6e/v7x perf path; softmax + accumulation stay in f32).
    _run_case(k4, B=2, Q=160, K=192, Dq=32, Dk=32, Dv=32, H=64,
              valid_lens=[100, 192], compute_dtype=jnp.bfloat16,
              atol=5e-2, rtol=5e-2)

    print("KERNEL_OK")
</pallas_src>

<mosaic_0001>
module attributes {stable_mosaic.version = 11 : i64} {
  func.func @kernel(%arg0: i32, %arg1: i32, %arg2: memref<2xi32, #tpu.memory_space<smem>>, %arg3: memref<1x8x32xf32, #tpu.memory_space<vmem>>, %arg4: memref<1x1x32x8xf32, #tpu.memory_space<vmem>>, %arg5: memref<1x8x16xf32, #tpu.memory_space<vmem>>, %arg6: memref<32x1xf32, #tpu.memory_space<vmem>>, %arg7: memref<1x8x16xf32, #tpu.memory_space<vmem>>, %arg8: memref<1x8x8xf32, #tpu.memory_space<vmem>>, %arg9: memref<1x8x8xf32, #tpu.memory_space<vmem>>) attributes {dimension_semantics = [#tpu.dimension_semantics<parallel>, #tpu.dimension_semantics<parallel>], iteration_bounds = array<i64: 2, 1>, scalar_prefetch = 1 : i64, scratch_operands = 1 : i64, tpu.core_type = #tpu.core_type<tc>, window_params = [{transform_indices = @transform_0, window_bounds = array<i64: 1, 8, 32>}, {transform_indices = @transform_1, window_bounds = array<i64: 1, 1, 32, 8>}, {transform_indices = @transform_2, window_bounds = array<i64: 1, 8, 16>}, {pipeline_mode = #tpu.pipeline_mode<synchronous>, transform_indices = @transform_3, window_bounds = array<i64: 32, 1>}, {transform_indices = @transform_4, window_bounds = array<i64: 1, 8, 16>}, {transform_indices = @transform_5, window_bounds = array<i64: 1, 8, 8>}]} {
    %0 = arith.index_cast %arg0 : i32 to index
    %1 = memref.load %arg2[%0] : memref<2xi32, #tpu.memory_space<smem>>
    %c0 = arith.constant 0 : index
    %c0_0 = arith.constant 0 : index
    %c0_1 = arith.constant 0 : index
    %2 = vector.load %arg3[%c0, %c0_0, %c0_1] : memref<1x8x32xf32, #tpu.memory_space<vmem>>, vector<1x8x32xf32>
    %3 = vector.shape_cast %2 : vector<1x8x32xf32> to vector<8x32xf32>
    %4 = vector.shape_cast %3 : vector<8x32xf32> to vector<8x32x1xf32>
    %c0_2 = arith.constant 0 : index
    %c0_3 = arith.constant 0 : index
    %5 = vector.load %arg6[%c0_2, %c0_3] : memref<32x1xf32, #tpu.memory_space<vmem>>, vector<32x1xf32>
    %6 = vector.shape_cast %5 : vector<32x1xf32> to vector<1x32x1xf32>
    %c0_i32 = arith.constant 0 : i32
    %7 = arith.maxsi %1, %c0_i32 : i32
    %c8_i32 = arith.constant 8 : i32
    %8 = arith.minsi %7, %c8_i32 : i32
    %c7_i32 = arith.constant 7 : i32
    %9 = arith.addi %8, %c7_i32 : i32
    %c8_i32_4 = arith.constant 8 : i32
    %10 = arith.divsi %9, %c8_i32_4 : i32
    %c0_i32_5 = arith.constant 0 : i32
    %11 = arith.subi %10, %c0_i32_5 : i32
    %c1_i32 = arith.constant 1 : i32
    %c1_i32_6 = arith.constant 1 : i32
    %12 = arith.subi %c1_i32, %c1_i32_6 : i32
    %13 = arith.addi %11, %12 : i32
    %c1_i32_7 = arith.constant 1 : i32
    %14 = arith.divsi %13, %c1_i32_7 : i32
    %c1_i32_8 = arith.constant 1 : i32
    %c0_i32_9 = arith.constant 0 : i32
    %c0_i32_10 = arith.constant 0 : i32
    %15 = arith.subi %14, %c0_i32_10 : i32
    %16 = arith.addi %c0_i32_10, %15 : i32
    %c1_i32_11 = arith.constant 1 : i32
    scf.for %arg10 = %c0_i32_10 to %16 step %c1_i32_11  : i32 {
      %57 = arith.muli %arg10, %c1_i32_8 : i32
      %58 = arith.addi %c0_i32_9, %57 : i32
      %c0_34 = arith.constant 0 : index
      %59 = arith.index_cast %58 : i32 to index
      %c0_35 = arith.constant 0 : index
      %c0_36 = arith.constant 0 : index
      %60 = vector.load %arg4[%c0_34, %59, %c0_35, %c0_36] : memref<1x1x32x8xf32, #tpu.memory_space<vmem>>, vector<1x1x32x8xf32>
      %61 = vector.shape_cast %60 : vector<1x1x32x8xf32> to vector<32x8xf32>
      %cst_37 = arith.constant 0.000000e+00 : f32
      %62 = vector.broadcast %cst_37 : f32 to vector<8x8xf32>
      %63 = vector.extract_strided_slice %4 {offsets = [0, 0, 0], sizes = [8, 16, 1], strides = [1, 1, 1]} : vector<8x32x1xf32> to vector<8x16x1xf32>
      %64 = vector.extract_strided_slice %61 {offsets = [0, 0], sizes = [16, 8], strides = [1, 1]} : vector<32x8xf32> to vector<16x8xf32>
      %65 = vector.shape_cast %64 : vector<16x8xf32> to vector<1x16x8xf32>
      %66 = vector.broadcast %63 : vector<8x16x1xf32> to vector<8x16x8xf32>
      %67 = vector.broadcast %65 : vector<1x16x8xf32> to vector<8x16x8xf32>
      %68 = arith.addf %66, %67 : vector<8x16x8xf32>
      %69 = math.tanh %68 : vector<8x16x8xf32>
      %70 = vector.extract_strided_slice %6 {offsets = [0, 0, 0], sizes = [1, 16, 1], strides = [1, 1, 1]} : vector<1x32x1xf32> to vector<1x16x1xf32>
      %71 = vector.broadcast %70 : vector<1x16x1xf32> to vector<8x16x8xf32>
      %72 = arith.mulf %69, %71 : vector<8x16x8xf32>
      %cst_38 = arith.constant dense<0.000000e+00> : vector<8x8xf32>
      %73 = vector.multi_reduction <add>, %72, %cst_38 [1] : vector<8x16x8xf32> to vector<8x8xf32>
      %74 = arith.addf %62, %73 : vector<8x8xf32>
      %75 = vector.extract_strided_slice %4 {offsets = [0, 16, 0], sizes = [8, 16, 1], strides = [1, 1, 1]} : vector<8x32x1xf32> to vector<8x16x1xf32>
      %76 = vector.extract_strided_slice %61 {offsets = [16, 0], sizes = [16, 8], strides = [1, 1]} : vector<32x8xf32> to vector<16x8xf32>
      %77 = vector.shape_cast %76 : vector<16x8xf32> to vector<1x16x8xf32>
      %78 = vector.broadcast %75 : vector<8x16x1xf32> to vector<8x16x8xf32>
      %79 = vector.broadcast %77 : vector<1x16x8xf32> to vector<8x16x8xf32>
      %80 = arith.addf %78, %79 : vector<8x16x8xf32>
      %81 = math.tanh %80 : vector<8x16x8xf32>
      %82 = vector.extract_strided_slice %6 {offsets = [0, 16, 0], sizes = [1, 16, 1], strides = [1, 1, 1]} : vector<1x32x1xf32> to vector<1x16x1xf32>
      %83 = vector.broadcast %82 : vector<1x16x1xf32> to vector<8x16x8xf32>
      %84 = arith.mulf %81, %83 : vector<8x16x8xf32>
      %cst_39 = arith.constant dense<0.000000e+00> : vector<8x8xf32>
      %85 = vector.multi_reduction <add>, %84, %cst_39 [1] : vector<8x16x8xf32> to vector<8x8xf32>
      %86 = arith.addf %74, %85 : vector<8x8xf32>
      %87 = arith.index_cast %58 : i32 to index
      %c0_40 = arith.constant 0 : index
      %c0_41 = arith.constant 0 : index
      %88 = vector.load %arg9[%87, %c0_40, %c0_41] : memref<1x8x8xf32, #tpu.memory_space<vmem>>, vector<1x8x8xf32>
      %89 = vector.shape_cast %88 : vector<1x8x8xf32> to vector<8x8xf32>
      %90 = vector.shape_cast %86 : vector<8x8xf32> to vector<1x8x8xf32>
      tpu.vector_store %arg9[%87, %c0_40, %c0_41], %90 {strides = array<i32>} : memref<1x8x8xf32, #tpu.memory_space<vmem>>, vector<1x8x8xf32>,
    }
    %c0_12 = arith.constant 0 : index
    %c0_13 = arith.constant 0 : index
    %c0_14 = arith.constant 0 : index
    %17 = vector.load %arg9[%c0_12, %c0_13, %c0_14] : memref<1x8x8xf32, #tpu.memory_space<vmem>>, vector<1x8x8xf32>
    %18 = tpu.iota {dimensions = array<i32: 0>} : vector<1x8x8xi32>
    %c8_i32_15 = arith.constant 8 : i32
    %19 = vector.broadcast %c8_i32_15 : i32 to vector<1x8x8xi32>
    %20 = arith.muli %18, %19 : vector<1x8x8xi32>
    %21 = tpu.iota {dimensions = array<i32: 2>} : vector<1x8x8xi32>
    %22 = arith.addi %20, %21 : vector<1x8x8xi32>
    %23 = vector.broadcast %1 : i32 to vector<1x8x8xi32>
    %24 = arith.cmpi slt, %22, %23 : vector<1x8x8xi32>
    %cst = arith.constant -1.000000e+06 : f32
    %25 = vector.broadcast %cst : f32 to vector<1x8x8xf32>
    %26 = arith.select %24, %17, %25 : vector<1x8x8xi1>, vector<1x8x8xf32>
    %cst_16 = arith.constant dense<0xFF800000> : vector<1x8xf32>
    %27 = vector.multi_reduction <maximumf>, %26, %cst_16 [2] : vector<1x8x8xf32> to vector<1x8xf32>
    %28 = vector.shape_cast %27 : vector<1x8xf32> to vector<1x8x1xf32>
    %cst_17 = arith.constant dense<0xFF800000> : vector<8x1xf32>
    %29 = vector.multi_reduction <maximumf>, %28, %cst_17 [0] : vector<1x8x1xf32> to vector<8x1xf32>
    %30 = vector.shape_cast %29 : vector<8x1xf32> to vector<1x8x1xf32>
    %31 = vector.broadcast %30 : vector<1x8x1xf32> to vector<1x8x8xf32>
    %32 = arith.subf %26, %31 : vector<1x8x8xf32>
    %33 = math.exp %32 : vector<1x8x8xf32>
    %cst_18 = arith.constant dense<0.000000e+00> : vector<1x8xf32>
    %34 = vector.multi_reduction <add>, %33, %cst_18 [2] : vector<1x8x8xf32> to vector<1x8xf32>
    %35 = vector.shape_cast %34 : vector<1x8xf32> to vector<1x8x1xf32>
    %cst_19 = arith.constant dense<0.000000e+00> : vector<8x1xf32>
    %36 = vector.multi_reduction <add>, %35, %cst_19 [0] : vector<1x8x1xf32> to vector<8x1xf32>
    %37 = vector.shape_cast %36 : vector<8x1xf32> to vector<1x8x1xf32>
    %38 = tpu.reciprocal %37 {approx = true} : vector<1x8x1xf32> -> vector<1x8x1xf32>
    %39 = arith.mulf %37, %38 : vector<1x8x1xf32>
    %cst_20 = arith.constant 2.000000e+00 : f32
    %40 = vector.broadcast %cst_20 : f32 to vector<1x8x1xf32>
    %41 = arith.subf %40, %39 : vector<1x8x1xf32>
    %42 = arith.mulf %38, %41 : vector<1x8x1xf32>
    %43 = vector.broadcast %42 : vector<1x8x1xf32> to vector<1x8x8xf32>
    %44 = arith.mulf %33, %43 : vector<1x8x8xf32>
    %45 = vector.shape_cast %44 : vector<1x8x8xf32> to vector<8x8xf32>
    %c0_21 = arith.constant 0 : index
    %c0_22 = arith.constant 0 : index
    %c0_23 = arith.constant 0 : index
    %46 = vector.load %arg8[%c0_21, %c0_22, %c0_23] : memref<1x8x8xf32, #tpu.memory_space<vmem>>, vector<1x8x8xf32>
    %47 = vector.shape_cast %46 : vector<1x8x8xf32> to vector<8x8xf32>
    %48 = vector.shape_cast %45 : vector<8x8xf32> to vector<1x8x8xf32>
    tpu.vector_store %arg8[%c0_21, %c0_22, %c0_23], %48 {strides = array<i32>} : memref<1x8x8xf32, #tpu.memory_space<vmem>>, vector<1x8x8xf32>,
    %c0_24 = arith.constant 0 : index
    %c0_25 = arith.constant 0 : index
    %c0_26 = arith.constant 0 : index
    %49 = vector.load %arg8[%c0_24, %c0_25, %c0_26] : memref<1x8x8xf32, #tpu.memory_space<vmem>>, vector<1x8x8xf32>
    %50 = vector.shape_cast %49 : vector<1x8x8xf32> to vector<8x8xf32>
    %c0_27 = arith.constant 0 : index
    %c0_28 = arith.constant 0 : index
    %c0_29 = arith.constant 0 : index
    %51 = vector.load %arg5[%c0_27, %c0_28, %c0_29] : memref<1x8x16xf32, #tpu.memory_space<vmem>>, vector<1x8x16xf32>
    %52 = vector.shape_cast %51 : vector<1x8x16xf32> to vector<8x16xf32>
    %cst_30 = arith.constant dense<0.000000e+00> : vector<8x16xf32>
    %53 = tpu.matmul %50, %52, %cst_30 {dimension_numbers = #tpu.dot_dimension_numbers<[1], [0], [0], [1], [0, 0, 1, 1], [], []>} : vector<8x8xf32>, vector<8x16xf32>, vector<8x16xf32> -> vector<8x16xf32>
    %c0_31 = arith.constant 0 : index
    %c0_32 = arith.constant 0 : index
    %c0_33 = arith.constant 0 : index
    %54 = vector.load %arg7[%c0_31, %c0_32, %c0_33] : memref<1x8x16xf32, #tpu.memory_space<vmem>>, vector<1x8x16xf32>
    %55 = vector.shape_cast %54 : vector<1x8x16xf32> to vector<8x16xf32>
    %56 = vector.shape_cast %53 : vector<8x16xf32> to vector<1x8x16xf32>
    tpu.vector_store %arg7[%c0_31, %c0_32, %c0_33], %56 {strides = array<i32>} : memref<1x8x16xf32, #tpu.memory_space<vmem>>, vector<1x8x16xf32>,
    return
  }
  func.func @transform_0(%arg0: i32, %arg1: i32, %arg2: memref<2xi32, #tpu.memory_space<smem>>) -> (i32, i32, i32) {
    %c0_i32 = arith.constant 0 : i32
    %c0_i32_0 = arith.constant 0 : i32
    return %arg0, %arg1, %c0_i32 : i32, i32, i32
  }
  func.func @transform_1(%arg0: i32, %arg1: i32, %arg2: memref<2xi32, #tpu.memory_space<smem>>) -> (i32, i32, i32, i32) {
    %c0_i32 = arith.constant 0 : i32
    %c0_i32_0 = arith.constant 0 : i32
    %c0_i32_1 = arith.constant 0 : i32
    %c0_i32_2 = arith.constant 0 : i32
    return %arg0, %c0_i32, %c0_i32_0, %c0_i32_1 : i32, i32, i32, i32
  }
  func.func @transform_2(%arg0: i32, %arg1: i32, %arg2: memref<2xi32, #tpu.memory_space<smem>>) -> (i32, i32, i32) {
    %c0_i32 = arith.constant 0 : i32
    %c0_i32_0 = arith.constant 0 : i32
    %c0_i32_1 = arith.constant 0 : i32
    return %arg0, %c0_i32, %c0_i32_0 : i32, i32, i32
  }
  func.func @transform_3(%arg0: i32, %arg1: i32, %arg2: memref<2xi32, #tpu.memory_space<smem>>) -> (i32, i32) {
    %c0_i32 = arith.constant 0 : i32
    %c0_i32_0 = arith.constant 0 : i32
    %c0_i32_1 = arith.constant 0 : i32
    return %c0_i32, %c0_i32_0 : i32, i32
  }
  func.func @transform_4(%arg0: i32, %arg1: i32, %arg2: memref<2xi32, #tpu.memory_space<smem>>) -> (i32, i32, i32) {
    %c0_i32 = arith.constant 0 : i32
    %c0_i32_0 = arith.constant 0 : i32
    return %arg0, %arg1, %c0_i32 : i32, i32, i32
  }
  func.func @transform_5(%arg0: i32, %arg1: i32, %arg2: memref<2xi32, #tpu.memory_space<smem>>) -> (i32, i32, i32) {
    %c0_i32 = arith.constant 0 : i32
    %c0_i32_0 = arith.constant 0 : i32
    return %arg0, %arg1, %c0_i32 : i32, i32, i32
  }
}

</mosaic_0001>

<bundles_post_ra>
// kernel: tpu_custom_call.1
= control target key start
LH: loop header
LB: loop body
LE: loop exit
PB: predicated region body
PF: predicated region fallthrough
CT: control target
= control target key end

     0   :  { %s1877_s0 = inlined_call_operand.vmem [shape: s32[2], index: 0, kind: input, shape index: {}]   ;;  %s1878_s1 = inlined_call_operand.vmem [shape: f32[2,8,32], index: 1, kind: input, shape index: {}]   ;;  %s1879_s2 = inlined_call_operand.vmem [shape: f32[2,1,32,8], index: 2, kind: input, shape index: {}]   ;;  %s1880_s3 = inlined_call_operand.vmem [shape: f32[2,8,16], index: 3, kind: input, shape index: {}]   ;;  %s1881_s4 = inlined_call_operand.vmem [shape: f32[32,1], index: 4, kind: input, shape index: {}]   ;;  %s1882_s5 = inlined_call_operand.hbm [shape: f32[2,8,16], index: 5, kind: output, shape index: {0}]   ;;  %s1883_s6 = inlined_call_operand.hbm [shape: f32[2,8,8], index: 6, kind: output, shape index: {1}]  }
   0x1   :  { %1885 = sst [smem:[#allocation34_spill]] %s1878_s1  ;;  %s12_s23 = sshll.u32 %s1877_s0, 4  ;;  %s13_s23 = int_to_ptr.vmem [resolvable:$true] %s12_s23 }
   0x2   :  { %s1236_s24 = scalar_lea.vmem %s13_s23, 16  ;;  %p1241_p1 = scmp.lt.s32.totalorder %s13_s23, %s13_s23 }
   0x3   :  { %p1237_p0 = scmp.ne.s32.totalorder %s13_s23, %s1236_s24  ;;  %p1242_p2 = scmp.lt.s32.totalorder %s1236_s24, %s1236_s24 }
   0x5   :  { %p1243_p3 = por %p1242_p2, %p1241_p1 }
   0x7   :  { %p1244_p4 = pnand %p1243_p3, %p1237_p0 }
   0x9   :  { %1247 = shalt.err (!%p1244_p4)  }
   0xa   :  { %s1370_s25 = smov [#allocation4]  }
   0xb   :  { %15 = dma.vmem_to_smem %s13_s23, 16, %s1370_s25, [#allocation3] }
   0xc   :  { %1332 = dma.done.wait [#allocation3], 16 }
   0xd   :  { %1333 = vsyncadd [#allocation3], 4294967280 }
   0xe   :  { %17 = sfence }
   0xf   :  { %18 = vsyncpa [#allocation6], 0 }
  0x10   :  { %20 = vsyncpa [#allocation6 + $0x1], 0 }
  0x11   :  { %21 = vsyncpa [#allocation8], 0 }
  0x12   :  { %23 = vsyncpa [#allocation8 + $0x1], 0  ;;  %s1414_s26 = smov 0   ;;  %s1416_s0 = smov 0  }
  0x13   :  { %s1418_s27 = smov 0   ;;  %s1420_s28 = smov 0  }
  0x14   :  { %s1422_s29 = smov 0   ;;  %s1424_s30 = smov 0  }
  0x15 LB: > { %s1057_s7 = sadd.s32 4294967295, %s1364_s30   ;;  %s1058_s8 = sadd.s32 4294967294, %s1364_s30   ;;  %s1364_s30 = sphi %s1424_s30, %s29_s30   ;;  %s1360_s29 = sphi %s1422_s29, %s1938_s29   ;;  %s1356_s28 = sphi %s1420_s28, %s1937_s28   ;;  %s1352_s27 = sphi %s1418_s27, %s1936_s27   ;;  %s1348_s0 = sphi %s1416_s0, %s1935_s0   ;;  %s1344_s26 = sphi %s1414_s26, %s1934_s26  }
  0x16   : > { %s41_s9 = sadd.s32 1, %s1360_s29  ;;  %s151_s10 = sadd.s32 1, %s1352_s27 }
  0x17   : > { %p43_p5 = scmp.ge.s32.totalorder %s41_s9, 2  ;;  %p161_p6 = scmp.ne.s32.totalorder %s1352_s27, %s1348_s0 }
  0x18   : > { %p162_p7 = scmp.eq.s32.totalorder %s1057_s7, 1  ;;  %p167_p8 = scmp.ne.s32.totalorder %s1348_s0, %s1344_s26 }
  0x19   : > { %s1940_s9 = smov (%p43_p5, %s41_s9), 0  ;;  %p168_p10 = scmp.eq.s32.totalorder %s1058_s8, 1 }
  0x1a   : > { %p1454_p9 = por %p162_p7, %p161_p6  ;;  %s146_s12 = ssub.s32 %s1360_s29, %s1940_s9 }
  0x1b   : > { %p1061_p11 = scmp.ge.s32.totalorder %s1364_s30, 1  ;;  %p149_p12 = scmp.eq.s32.totalorder %s146_s12, 0 }
  0x1c   : > { %p1461_p13 = por %p168_p10, %p167_p8  ;;  %p242_p0 = scmp.lt.s32.totalorder %s1364_s30, 3 }
  0x1d   : > { %s1467_s14 = scalar_select %p149_p12, %s1352_s27, %s151_s10  }
  0x1e   : > { %p243_p1 = pnand %p1061_p11, %p242_p0 }
  0x20   : > { %246 = sbr.rel (%p243_p1) target bundleno = 971 (0x3cb), region = 36 }
  0x27   : > { %p286_p2 = scmp.lt.s32.totalorder %s1356_s28, 1  ;;  %v1884_v0 = vlaneseq  ;;  %s1888_s1 = sld [smem:[#allocation34_spill]]  ;;  %v1507_v17 = vld [vmem:[%s1881_s4] sm:$0xff]  ;;  %v1512_v18 = vld [vmem:[%s1881_s4 + $0x8] sm:$0xff]  ;;  %v1517_v19 = vld [vmem:[%s1881_s4 + $0x10] sm:$0xff] }
  0x28   : > { %s1493_s8 = sld [smem:[#allocation4 + %s1356_s28]]  ;;  %1889 = vst [vmem:[#allocation12_spill] sm:$0xff] %v1507_v17  ;;  %1890 = vst [vmem:[#allocation13_spill] sm:$0xff] %v1512_v18  ;;  %v1522_v20 = vld [vmem:[%s1881_s4 + $0x18] sm:$0xff] }
  0x29   : > { %s287_s15 = scalar_select %p286_p2, %s1356_s28, 1  ;;  %v1472_v1 = vshrl.u32 %v1884_v0, 7  ;;  %1891 = vst [vmem:[#allocation14_spill] sm:$0xff] %v1517_v19  ;;  %1892 = vst [vmem:[#allocation15_spill] sm:$0xff] %v1522_v20 }
  0x2b   : > { %s1064_s16 = sshll.u32 %s287_s15, 3  ;;  %s1084_s17 = sshll.u32 %s287_s15, 5  ;;  %v306_v2 = vsub.s32 0, %v1472_v1  ;;  %v325_v5 = vsub.s32 1, %v1472_v1  ;;  %v344_v7 = vsub.s32 2, %v1472_v1  ;;  %v363_v9 = vsub.s32 3, %v1472_v1 }
  0x2c   : > { %s1481_s23 = scalar_lea.vmem %s1879_s2, %s1084_s17  ;;  %s1486_s7 = scalar_lea.vmem %s1880_s3, %s1064_s16  ;;  %v382_v11 = vsub.s32 4, %v1472_v1  ;;  %v401_v13 = vsub.s32 5, %v1472_v1  ;;  %v420_v15 = vsub.s32 6, %v1472_v1  ;;  %v439_v21 = vsub.s32 7, %v1472_v1 }
  0x2d   : > { %s292_s20 = scalar_lea.vmem %s1888_s1, %s1064_s16  ;;  %s1501_s16 = sand.u32 1, %s1348_s0  }
  0x2e   : > { %v303_v3 = vld [vmem:[%s292_s20] sm:$0xff]  ;;  %p460_p3 = scmp.gt.s32.totalorder %s1493_s8, 0  ;;  %p1068_p4 = scmp.lt.s32.totalorder %s1493_s8, 8 }
  0x2f   : > { %v307_v4 = vrot.slane %v303_v3, %v306_v2  ;;  %v326_v6 = vrot.slane %v303_v3, %v325_v5  ;;  %v345_v8 = vrot.slane %v303_v3, %v344_v7  ;;  %v364_v10 = vrot.slane %v303_v3, %v363_v9  ;;  %s1062_s17 = sshll.u32 %s1501_s16, 3 }
  0x30   : > { %v383_v12 = vrot.slane %v303_v3, %v382_v11  ;;  %v402_v14 = vrot.slane %v303_v3, %v401_v13  ;;  %s461_s10 = scalar_select %p460_p3, %s1493_s8, 0  ;;  %v421_v16 = vrot.slane %v303_v3, %v420_v15  ;;  %v440_v22 = vrot.slane %v303_v3, %v439_v21 }
  0x31   : > { %317 = vbcast.lane.b32.xlu1 %v307_v4, 272  ;;  %309 = vbcast.lane.b32.xlu0 %v307_v4, 256  ;;  %s1593_s1 = scalar_lea.vmem [#allocation5], %s1062_s17 }
  0x32   : > { %s1942_s10 = smov (!%p1068_p4, %s461_s10), 8 }
  0x33   : > { %s464_s12 = sadd.s32 7, %s1942_s10 }
  0x34   : > { %s466_s15 = ssub.s32 0, %s464_s12  ;;  %p465_p5 = scmp.lt.s32.totalorder %s464_s12, 0 }
  0x35   : > { %321 = vbcast.lane.b32.xlu1 %v307_v4, 280  ;;  %313 = vbcast.lane.b32.xlu0 %v307_v4, 264  ;;  %s1073_s18 = smin.u32 %s466_s15, %s464_s12 }
  0x36   : > { %s468_s12 = sshrl.u32 %s1073_s18, 3  ;;  %s1597_s18 = scalar_lea.vmem [#allocation7], %s1062_s17 }
  0x37   : > { %s469_s15 = ssub.s32 0, %s468_s12 }
  0x38   : > { %s1944_s15 = smov (!%p465_p5, %s469_s15), %s468_s12 }
  0x39   : > { %332 = vbcast.lane.b32.xlu1 %v326_v6, 264  ;;  %328 = vbcast.lane.b32.xlu0 %v326_v6, 256  ;;  %p1074_p6 = scmp.le.s32.totalorder %s1944_s15, 0 }
  0x3a   : > { %s1600_s19 = smov (!%p1074_p6), 0  }
  0x3d   : > { %340 = vbcast.lane.b32.xlu1 %v326_v6, 280  ;;  %336 = vbcast.lane.b32.xlu0 %v326_v6, 272 }
  0x41   : > { %351 = vbcast.lane.b32.xlu1 %v345_v8, 264  ;;  %347 = vbcast.lane.b32.xlu0 %v345_v8, 256 }
  0x45   : > { %359 = vbcast.lane.b32.xlu1 %v345_v8, 280  ;;  %355 = vbcast.lane.b32.xlu0 %v345_v8, 272 }
  0x49   : > { %370 = vbcast.lane.b32.xlu1 %v364_v10, 264  ;;  %366 = vbcast.lane.b32.xlu0 %v364_v10, 256 }
  0x4d   : > { %378 = vbcast.lane.b32.xlu1 %v364_v10, 280  ;;  %374 = vbcast.lane.b32.xlu0 %v364_v10, 272 }
  0x51   : > { %389 = vbcast.lane.b32.xlu1 %v383_v12, 264  ;;  %385 = vbcast.lane.b32.xlu0 %v383_v12, 256 }
  0x55   : > { %397 = vbcast.lane.b32.xlu1 %v383_v12, 280  ;;  %393 = vbcast.lane.b32.xlu0 %v383_v12, 272 }
  0x59   : > { %408 = vbcast.lane.b32.xlu1 %v402_v14, 264  ;;  %404 = vbcast.lane.b32.xlu0 %v402_v14, 256 }
  0x5d   : > { %416 = vbcast.lane.b32.xlu1 %v402_v14, 280  ;;  %412 = vbcast.lane.b32.xlu0 %v402_v14, 272 }
  0x61   : > { %427 = vbcast.lane.b32.xlu1 %v421_v16, 264  ;;  %423 = vbcast.lane.b32.xlu0 %v421_v16, 256 }
  0x65   : > { %435 = vbcast.lane.b32.xlu1 %v421_v16, 280  ;;  %431 = vbcast.lane.b32.xlu0 %v421_v16, 272 }
  0x69   : > { %446 = vbcast.lane.b32.xlu1 %v440_v22, 264  ;;  %442 = vbcast.lane.b32.xlu0 %v440_v22, 256 }
  0x6d   : > { %454 = vbcast.lane.b32.xlu1 %v440_v22, 280  ;;  %450 = vbcast.lane.b32.xlu0 %v440_v22, 272 }
  0xa3   : > { %v1527_v23 = vpop.permute.xlu1 %317  ;;  %v1529_v24 = vpop.permute.xlu0 %309 }
  0xa4   : > { %1893 = vst [vmem:[#allocation16_spill] sm:$0xff] %v1527_v23  ;;  %1894 = vst [vmem:[#allocation17_spill] sm:$0xff] %v1529_v24 }
  0xa7   : > { %v1531_v25 = vpop.permute.xlu1 %321  ;;  %v1533_v26 = vpop.permute.xlu0 %313 }
  0xa8   : > { %1895 = vst [vmem:[#allocation18_spill] sm:$0xff] %v1531_v25  ;;  %1896 = vst [vmem:[#allocation19_spill] sm:$0xff] %v1533_v26 }
  0xab   : > { %v1535_v27 = vpop.permute.xlu1 %332  ;;  %v1537_v28 = vpop.permute.xlu0 %328 }
  0xac   : > { %1897 = vst [vmem:[#allocation20_spill] sm:$0xff] %v1535_v27  ;;  %1898 = vst [vmem:[#allocation21_spill] sm:$0xff] %v1537_v28 }
  0xaf   : > { %v1539_v29 = vpop.permute.xlu1 %340  ;;  %v1541_v30 = vpop.permute.xlu0 %336 }
  0xb0   : > { %1899 = vst [vmem:[#allocation22_spill] sm:$0xff] %v1539_v29  ;;  %1900 = vst [vmem:[#allocation23_spill] sm:$0xff] %v1541_v30 }
  0xb3   : > { %v1543_v31 = vpop.permute.xlu1 %351  ;;  %v1545_v32 = vpop.permute.xlu0 %347 }
  0xb4   : > { %1901 = vst [vmem:[#allocation24_spill] sm:$0xff] %v1543_v31  ;;  %1902 = vst [vmem:[#allocation25_spill] sm:$0xff] %v1545_v32 }
  0xb7   : > { %v1547_v33 = vpop.permute.xlu1 %359  ;;  %v1549_v34 = vpop.permute.xlu0 %355 }
  0xb8   : > { %1903 = vst [vmem:[#allocation26_spill] sm:$0xff] %v1547_v33  ;;  %1904 = vst [vmem:[#allocation27_spill] sm:$0xff] %v1549_v34 }
  0xbb   : > { %v1551_v35 = vpop.permute.xlu1 %370  ;;  %v1553_v36 = vpop.permute.xlu0 %366 }
  0xbc   : > { %1905 = vst [vmem:[#allocation28_spill] sm:$0xff] %v1551_v35  ;;  %1906 = vst [vmem:[#allocation29_spill] sm:$0xff] %v1553_v36 }
  0xbf   : > { %v1555_v37 = vpop.permute.xlu1 %378  ;;  %v1557_v38 = vpop.permute.xlu0 %374 }
  0xc0   : > { %1907 = vst [vmem:[#allocation30_spill] sm:$0xff] %v1555_v37  ;;  %1908 = vst [vmem:[#allocation31_spill] sm:$0xff] %v1557_v38 }
  0xc3   : > { %v1559_v39 = vpop.permute.xlu1 %389  ;;  %v1561_v40 = vpop.permute.xlu0 %385 }
  0xc4   : > { %1909 = vst [vmem:[#allocation32_spill] sm:$0xff] %v1559_v39  ;;  %1910 = vst [vmem:[#allocation33_spill] sm:$0xff] %v1561_v40 }
  0xc7   : > { %v1563_v41 = vpop.permute.xlu1 %397  ;;  %v1565_v42 = vpop.permute.xlu0 %393 }
  0xcb   : > { %v1567_v43 = vpop.permute.xlu1 %408  ;;  %v1569_v44 = vpop.permute.xlu0 %404 }
  0xcf   : > { %v1571_v45 = vpop.permute.xlu1 %416  ;;  %v1573_v46 = vpop.permute.xlu0 %412 }
  0xd3   : > { %v1575_v47 = vpop.permute.xlu1 %427  ;;  %v1577_v48 = vpop.permute.xlu0 %423 }
  0xd7   : > { %v1579_v49 = vpop.permute.xlu1 %435  ;;  %v1581_v50 = vpop.permute.xlu0 %431 }
  0xd9   : > { %1004 = sbr.rel (%p1074_p6) target bundleno = 409 (0x199), region = 97 }
  0xdb   : > { %v1583_v51 = vpop.permute.xlu1 %446  ;;  %v1585_v52 = vpop.permute.xlu0 %442 }
  0xdf   : > { %v1587_v53 = vpop.permute.xlu1 %454  ;;  %v1589_v54 = vpop.permute.xlu0 %450 }
  0xe0 LB: >> { %v1371_v55 = vmov 0   ;;  %v1911_v19 = vld [vmem:[#allocation14_spill] sm:$0xff]  ;;  %v1912_v17 = vld [vmem:[#allocation12_spill] sm:$0xff]  ;;  %v1913_v20 = vld [vmem:[#allocation15_spill] sm:$0xff]  ;;  %s1075_s17 = sshll.u32 %s1368_s19, 5  ;;  %vm541_vm0 = vcmask 64512   ;;  %s1368_s19 = sphi %s1600_s19, %s474_s19  }
  0xe1   : >> { %1167 = vset.pattern.permute.xlu1 %v1371_v55  ;;  %1166 = vset.pattern.permute.xlu0 %v1371_v55  ;;  %v1914_v18 = vld [vmem:[#allocation13_spill] sm:$0xff]  ;;  %s1611_s20 = scalar_lea.vmem %s1481_s23, %s1075_s17  ;;  %v1915_v23 = vld [vmem:[#allocation16_spill] sm:$0xff]  ;;  %v1916_v30 = vld [vmem:[#allocation23_spill] sm:$0xff]  ;;  %vm768_vm1 = vcmask 1041409   ;;  %vm770_vm2 = vcmask 1042434   ;;  %vm772_vm3 = vcmask 1043459  }
  0xe2   : >> { %656 = vperm.xlu1 %1167, %v1911_v19   ;;  %517 = vperm.xlu0 %1166, %v1912_v17   ;;  %v481_v56 = vld [vmem:[%s1611_s20 + $0x10] sm:$0xff]  ;;  %v1917_v34 = vld [vmem:[#allocation27_spill] sm:$0xff]  ;;  %v482_v9 = vld [vmem:[%s1611_s20 + $0x18] sm:$0xff]  ;;  %vm774_vm4 = vcmask 1044484   ;;  %vm776_vm5 = vcmask 1045509   ;;  %vm778_vm6 = vcmask 1046534  }
  0xe3   : >> { %v622_v57 = vadd.f32 %v481_v56, %v1915_v23  ;;  %v624_v58 = vadd.f32 %v481_v56, %v1916_v30  ;;  %v626_v59 = vadd.f32 %v481_v56, %v1917_v34  ;;  %v1918_v38 = vld [vmem:[#allocation31_spill] sm:$0xff]  ;;  %v630_v61 = vadd.f32 %v481_v56, %v1565_v42  ;;  %v1919_v24 = vld [vmem:[#allocation17_spill] sm:$0xff]  ;;  %v1924_v25 = vld [vmem:[#allocation18_spill] sm:$0xff]  ;;  %s1076_s21 = sshll.u32 %s1368_s19, 3  ;;  %s474_s19 = sadd.s32 1, %s1368_s19  }
  0xe4   : >> { %v628_v60 = vadd.f32 %v481_v56, %v1918_v38  ;;  %v632_v62 = vadd.f32 %v481_v56, %v1573_v46  ;;  %v479_v63 = vld [vmem:[%s1611_s20] sm:$0xff]  ;;  %v634_v1 = vadd.f32 %v481_v56, %v1581_v50  ;;  %v636_v2 = vadd.f32 %v481_v56, %v1589_v54  ;;  %v1920_v28 = vld [vmem:[#allocation21_spill] sm:$0xff]  ;;  %v1925_v29 = vld [vmem:[#allocation22_spill] sm:$0xff]  ;;  %s784_s22 = scalar_lea.vmem [#allocation2], %s1076_s21  ;;  %p473_p7 = scmp.ge.s32.totalorder %s474_s19, %s1944_s15 }
  0xe5   : >> { %1168 = vtanh.f32 %v622_v57  ;;  %v483_v3 = vadd.f32 %v479_v63, %v1919_v24  ;;  %v485_v4 = vadd.f32 %v479_v63, %v1920_v28  ;;  %v1921_v32 = vld [vmem:[#allocation25_spill] sm:$0xff]  ;;  %v493_v8 = vadd.f32 %v479_v63, %v1569_v44  ;;  %v1926_v33 = vld [vmem:[#allocation26_spill] sm:$0xff]  ;;  %v1928_v26 = vld [vmem:[#allocation19_spill] sm:$0xff] }
  0xe6   : >> { %661 = vperm.xlu1 %1167, %v1913_v20   ;;  %522 = vperm.xlu0 %1166, %v1914_v18   ;;  %1170 = vtanh.f32 %v624_v58  ;;  %v487_v5 = vadd.f32 %v479_v63, %v1921_v32  ;;  %v1922_v36 = vld [vmem:[#allocation29_spill] sm:$0xff]  ;;  %v495_v11 = vadd.f32 %v479_v63, %v1577_v48  ;;  %v497_v13 = vadd.f32 %v479_v63, %v1585_v52  ;;  %v1927_v37 = vld [vmem:[#allocation30_spill] sm:$0xff]  ;;  %v1929_v27 = vld [vmem:[#allocation20_spill] sm:$0xff] }
  0xe7   : >> { %1172 = vtanh.f32 %v626_v59  ;;  %v489_v6 = vadd.f32 %v479_v63, %v1922_v36  ;;  %v1923_v40 = vld [vmem:[#allocation33_spill] sm:$0xff]  ;;  %v623_v15 = vadd.f32 %v482_v9, %v1924_v25  ;;  %v625_v21 = vadd.f32 %v482_v9, %v1925_v29  ;;  %v1930_v31 = vld [vmem:[#allocation24_spill] sm:$0xff] }
  0xe8   : >> { %1174 = vtanh.f32 %v628_v60  ;;  %v491_v7 = vadd.f32 %v479_v63, %v1923_v40  ;;  %v627_v55 = vadd.f32 %v482_v9, %v1926_v33  ;;  %v629_v57 = vadd.f32 %v482_v9, %v1927_v37  ;;  %v1931_v35 = vld [vmem:[#allocation28_spill] sm:$0xff] }
  0xe9   : >> { %1176 = vtanh.f32 %v630_v61  ;;  %v631_v59 = vadd.f32 %v482_v9, %v1563_v41  ;;  %v633_v61 = vadd.f32 %v482_v9, %v1571_v45  ;;  %v1932_v39 = vld [vmem:[#allocation32_spill] sm:$0xff]  ;;  %vm780_vm7 = vcmask 1047559  }
  0xea   : >> { %1178 = vtanh.f32 %v632_v62  ;;  %v480_v62 = vld [vmem:[%s1611_s20 + $0x8] sm:$0xff] }
  0xeb   : >> { %1180 = vtanh.f32 %v634_v1  ;;  %v635_v1 = vadd.f32 %v482_v9, %v1579_v49  ;;  %v498_v0 = vadd.f32 %v480_v62, %v1583_v51 }
  0xec   : >> { %1182 = vtanh.f32 %v636_v2 }
  0xed   : >> { %1184 = vtanh.f32 %v483_v3  ;;  %v637_v3 = vadd.f32 %v482_v9, %v1587_v53  ;;  %v492_v9 = vadd.f32 %v480_v62, %v1932_v39 }
  0xee   : >> { %1186 = vtanh.f32 %v485_v4 }
  0xef   : >> { %v1630_v10 = vpop.eup %1168  ;;  %1188 = vtanh.f32 %v487_v5  ;;  %v484_v5 = vadd.f32 %v480_v62, %v1928_v26 }
  0xf0   : >> { %v1633_v12 = vpop.eup %1170  ;;  %1190 = vtanh.f32 %v489_v6 }
  0xf1   : >> { %v1636_v14 = vpop.eup %1172  ;;  %1192 = vtanh.f32 %v491_v7  ;;  %v486_v7 = vadd.f32 %v480_v62, %v1929_v27 }
  0xf2   : >> { %v1175_v16 = vpop.eup %1174  ;;  %1194 = vtanh.f32 %v493_v8 }
  0xf3   : >> { %v1177_v22 = vpop.eup %1176  ;;  %1196 = vtanh.f32 %v495_v11  ;;  %v488_v11 = vadd.f32 %v480_v62, %v1930_v31 }
  0xf4   : >> { %v1179_v56 = vpop.eup %1178  ;;  %1198 = vtanh.f32 %v497_v13 }
  0xf5   : >> { %v1181_v58 = vpop.eup %1180  ;;  %1200 = vtanh.f32 %v623_v15  ;;  %v490_v15 = vadd.f32 %v480_v62, %v1931_v35 }
  0xf6   : >> { %v1183_v60 = vpop.eup %1182  ;;  %1202 = vtanh.f32 %v625_v21 }
  0xf7   : >> { %v1185_v63 = vpop.eup %1184  ;;  %1204 = vtanh.f32 %v627_v55 }
  0xf8   : >> { %v1187_v2 = vpop.eup %1186  ;;  %1206 = vtanh.f32 %v629_v57  ;;  %v494_v57 = vadd.f32 %v480_v62, %v1567_v43 }
  0xf9   : >> { %v1189_v4 = vpop.eup %1188  ;;  %1208 = vtanh.f32 %v631_v59 }
  0xfa   : >> { %v1191_v6 = vpop.eup %1190  ;;  %1210 = vtanh.f32 %v633_v61  ;;  %v496_v61 = vadd.f32 %v480_v62, %v1575_v47 }
  0xfb   : >> { %v1193_v8 = vpop.eup %1192  ;;  %1212 = vtanh.f32 %v635_v1 }
  0xfc   : >> { %v1650_v13 = vpop.eup %1194  ;;  %1214 = vtanh.f32 %v637_v3 }
  0xfd   : >> { %v1653_v21 = vpop.eup %1196  ;;  %1216 = vtanh.f32 %v484_v5 }
  0xfe   : >> { %v1656_v55 = vpop.eup %1198  ;;  %1218 = vtanh.f32 %v486_v7 }
  0xff   : >> { %v1201_v59 = vpop.eup %1200  ;;  %1220 = vtanh.f32 %v488_v11 }
 0x100   : >> { %v1203_v1 = vpop.eup %1202  ;;  %1222 = vtanh.f32 %v490_v15 }
 0x101   : >> { %v1205_v3 = vpop.eup %1204  ;;  %1224 = vtanh.f32 %v492_v9 }
 0x102   : >> { %v1207_v17 = vpop.eup %1206  ;;  %1226 = vtanh.f32 %v494_v57 }
 0x103   : >> { %v1209_v18 = vpop.eup %1208  ;;  %1228 = vtanh.f32 %v496_v61 }
 0x104   : >> { %v1211_v20 = vpop.eup %1210  ;;  %1230 = vtanh.f32 %v498_v0 }
 0x105   : >> { %v1213_v23 = vpop.eup %1212 }
 0x106   : >> { %v1215_v9 = vpop.eup %1214 }
 0x107   : >> { %v1669_v61 = vpop.eup %1216 }
 0x161   : >> { %v657_v19 = vpop.permute.xlu1 %656  ;;  %v1661_v5 = vpop.permute.xlu0 %517 }
 0x162   : >> { %v664_v7 = vmul.f32 %v1630_v10, %v657_v19  ;;  %v666_v11 = vmul.f32 %v1633_v12, %v657_v19  ;;  %v668_v62 = vmul.f32 %v1636_v14, %v657_v19  ;;  %v670_v15 = vmul.f32 %v1175_v16, %v657_v19 }
 0x163   : >> { %v672_v24 = vmul.f32 %v1177_v22, %v657_v19  ;;  %v674_v25 = vmul.f32 %v1179_v56, %v657_v19  ;;  %v676_v57 = vmul.f32 %v1181_v58, %v657_v19  ;;  %v678_v26 = vmul.f32 %v1183_v60, %v657_v19  ;;  %v1683_v22 = vpop.eup %1218 }
 0x164   : >> { %v1667_v27 = vmul.f32 %v1185_v63, %v1661_v5  ;;  %v1672_v10 = vmul.f32 %v1187_v2, %v1661_v5  ;;  %v1675_v0 = vmul.f32 %v1189_v4, %v1661_v5  ;;  %v1678_v12 = vmul.f32 %v1191_v6, %v1661_v5  ;;  %v1685_v63 = vpop.eup %1220 }
 0x165   : >> { %v1681_v14 = vmul.f32 %v1193_v8, %v1661_v5  ;;  %v662_v16 = vpop.permute.xlu1 %661  ;;  %v1687_v30 = vpop.eup %1222  ;;  %v680_v6 = vsel %vm541_vm0, %v664_v7, 0.0  ;;  %v689_v31 = vsel %vm541_vm0, %v666_v11, 0.0  ;;  %v734_v35 = vsel %vm541_vm0, %v676_v57, 0.0 }
 0x166   : >> { %v665_v19 = vmul.f32 %v1201_v59, %v662_v16  ;;  %v667_v56 = vmul.f32 %v1203_v1, %v662_v16  ;;  %v669_v58 = vmul.f32 %v1205_v3, %v662_v16  ;;  %v671_v60 = vmul.f32 %v1207_v17, %v662_v16  ;;  %v1693_v59 = vpop.eup %1224 }
 0x167   : >> { %v673_v2 = vmul.f32 %v1209_v18, %v662_v16  ;;  %v675_v28 = vmul.f32 %v1211_v20, %v662_v16  ;;  %v677_v29 = vmul.f32 %v1213_v23, %v662_v16  ;;  %v679_v4 = vmul.f32 %v1215_v9, %v662_v16  ;;  %v1697_v20 = vpop.eup %1226 }
 0x168   : >> { %v681_v8 = vsel %vm541_vm0, %v665_v19, 0.0  ;;  %v690_v32 = vsel %vm541_vm0, %v667_v56, 0.0  ;;  %v698_v3 = vsel %vm541_vm0, %v668_v62, 0.0  ;;  %v699_v18 = vsel %vm541_vm0, %v669_v58, 0.0  ;;  %v1702_v11 = vpop.eup %1228 }
 0x169   : >> { %v682_v1 = vadd.f32 %v681_v8, %v680_v6  ;;  %v691_v17 = vadd.f32 %v690_v32, %v689_v31  ;;  %v700_v23 = vadd.f32 %v699_v18, %v698_v3  ;;  %v707_v9 = vsel %vm541_vm0, %v670_v15, 0.0  ;;  %v1705_v32 = vpop.eup %1230 }
 0x16a   : >> { %v708_v7 = vsel %vm541_vm0, %v671_v60, 0.0  ;;  %v716_v16 = vsel %vm541_vm0, %v672_v24, 0.0  ;;  %v717_v31 = vsel %vm541_vm0, %v673_v2, 0.0  ;;  %v725_v6 = vsel %vm541_vm0, %v674_v25, 0.0 }
 0x16b   : >> { %v683_v19 = vrot.slane %v682_v1, 4  ;;  %v692_v56 = vrot.slane %v691_v17, 4  ;;  %v709_v33 = vadd.f32 %v708_v7, %v707_v9  ;;  %v701_v62 = vrot.slane %v700_v23, 4 }
 0x16c   : >> { %v718_v58 = vadd.f32 %v717_v31, %v716_v16  ;;  %v726_v8 = vsel %vm541_vm0, %v675_v28, 0.0  ;;  %v735_v9 = vsel %vm541_vm0, %v677_v29, 0.0  ;;  %v743_v25 = vsel %vm541_vm0, %v678_v26, 0.0 }
 0x16d   : >> { %v684_v15 = vadd.f32 %v683_v19, %v682_v1  ;;  %v693_v3 = vadd.f32 %v692_v56, %v691_v17  ;;  %v710_v60 = vrot.slane %v709_v33, 4  ;;  %v727_v18 = vadd.f32 %v726_v8, %v725_v6 }
 0x16e   : >> { %v702_v24 = vadd.f32 %v701_v62, %v700_v23  ;;  %v719_v34 = vrot.slane %v718_v58, 4  ;;  %v736_v31 = vadd.f32 %v735_v9, %v734_v35  ;;  %v744_v57 = vsel %vm541_vm0, %v679_v4, 0.0  ;;  %v523_v35 = vpop.permute.xlu0 %522 }
 0x16f   : >> { %v685_v7 = vrot.slane %v684_v15, 2  ;;  %v694_v2 = vrot.slane %v693_v3, 2  ;;  %v711_v36 = vadd.f32 %v710_v60, %v709_v33  ;;  %v728_v37 = vrot.slane %v727_v18, 4 }
 0x170   : >> { %v703_v38 = vrot.slane %v702_v24, 2  ;;  %v720_v16 = vadd.f32 %v719_v34, %v718_v58  ;;  %v737_v62 = vrot.slane %v736_v31, 4  ;;  %v745_v34 = vadd.f32 %v744_v57, %v743_v25 }
 0x171   : >> { %v686_v28 = vadd.f32 %v685_v7, %v684_v15  ;;  %v695_v1 = vadd.f32 %v694_v2, %v693_v3  ;;  %v712_v17 = vrot.slane %v711_v36, 2  ;;  %v729_v19 = vadd.f32 %v728_v37, %v727_v18 }
 0x172   : >> { %v704_v56 = vadd.f32 %v703_v38, %v702_v24  ;;  %v721_v23 = vrot.slane %v720_v16, 2  ;;  %v738_v40 = vadd.f32 %v737_v62, %v736_v31  ;;  %v535_v26 = vmul.f32 %v1650_v13, %v1661_v5 }
 0x173   : >> { %v687_v6 = vrot.slane %v686_v28, 1  ;;  %v696_v29 = vrot.slane %v695_v1, 1  ;;  %v713_v8 = vadd.f32 %v712_v17, %v711_v36  ;;  %v730_v39 = vrot.slane %v729_v19, 2 }
 0x174   : >> { %v705_v33 = vrot.slane %v704_v56, 1  ;;  %v722_v60 = vadd.f32 %v721_v23, %v720_v16  ;;  %v537_v37 = vmul.f32 %v1653_v21, %v1661_v5  ;;  %v539_v4 = vmul.f32 %v1656_v55, %v1661_v5 }
 0x175   : >> { %v714_v38 = vrot.slane %v713_v8, 1  ;;  %v731_v58 = vadd.f32 %v730_v39, %v729_v19  ;;  %v739_v3 = vrot.slane %v738_v40, 2  ;;  %v746_v36 = vrot.slane %v745_v34, 4 }
 0x176   : >> { %v723_v15 = vrot.slane %v722_v60, 1  ;;  %v1719_v18 = vadd.f32 %v687_v6, %v686_v28  ;;  %v526_v9 = vmul.f32 %v1669_v61, %v523_v35  ;;  %v528_v7 = vmul.f32 %v1683_v22, %v523_v35 }
 0x177   : >> { %v732_v24 = vrot.slane %v731_v58, 1  ;;  %v1723_v2 = vadd.f32 %v696_v29, %v695_v1  ;;  %v1725_v13 = vadd.f32 %v705_v33, %v704_v56  ;;  %v1727_v21 = vadd.f32 %v739_v3, %v738_v40 }
 0x178   : >> { %v747_v39 = vadd.f32 %v746_v36, %v745_v34  ;;  %v1729_v16 = vadd.f32 %v714_v38, %v713_v8  ;;  %v1731_v55 = vadd.f32 %v723_v15, %v722_v60  ;;  %v530_v5 = vmul.f32 %v1685_v63, %v523_v35 }
 0x179   : >> { %v532_v31 = vmul.f32 %v1687_v30, %v523_v35  ;;  %v1735_v25 = vadd.f32 %v732_v24, %v731_v58  ;;  %v534_v22 = vmul.f32 %v1693_v59, %v523_v35  ;;  %v536_v28 = vmul.f32 %v1697_v20, %v523_v35 }
 0x17a   : >> { %v748_v61 = vrot.slane %v747_v39, 2  ;;  %v542_v40 = vsel %vm541_vm0, %v1667_v27, 0.0  ;;  %v543_v1 = vsel %vm541_vm0, %v526_v9, 0.0  ;;  %v551_v17 = vsel %vm541_vm0, %v1672_v10, 0.0 }
 0x17b   : >> { %v552_v19 = vsel %vm541_vm0, %v528_v7, 0.0  ;;  %v741_v63 = vrot.slane %v1727_v21, 1  ;;  %v538_v30 = vmul.f32 %v1702_v11, %v523_v35  ;;  %v544_v56 = vadd.f32 %v543_v1, %v542_v40 }
 0x17c   : >> { %v553_v23 = vadd.f32 %v552_v19, %v551_v17  ;;  %v540_v59 = vmul.f32 %v1705_v32, %v523_v35  ;;  %v560_v20 = vsel %vm541_vm0, %v1675_v0, 0.0  ;;  %v561_v27 = vsel %vm541_vm0, %v530_v5, 0.0 }
 0x17d   : >> { %v570_v62 = vsel %vm541_vm0, %v532_v31, 0.0  ;;  %v545_v57 = vrot.slane %v544_v56, 4  ;;  %v562_v10 = vadd.f32 %v561_v27, %v560_v20  ;;  %v569_v29 = vsel %vm541_vm0, %v1678_v12, 0.0 }
 0x17e   : >> { %v554_v6 = vrot.slane %v553_v23, 4  ;;  %v1754_v8 = vadd.f32 %v748_v61, %v747_v39  ;;  %v571_v11 = vadd.f32 %v570_v62, %v569_v29  ;;  %v578_v33 = vsel %vm541_vm0, %v1681_v14, 0.0 }
 0x17f   : >> { %v579_v32 = vsel %vm541_vm0, %v534_v22, 0.0  ;;  %v546_v60 = vadd.f32 %v545_v57, %v544_v56  ;;  %v563_v34 = vrot.slane %v562_v10, 4  ;;  %v587_v35 = vsel %vm541_vm0, %v535_v26, 0.0 }
 0x180   : >> { %v555_v0 = vadd.f32 %v554_v6, %v553_v23  ;;  %v572_v38 = vrot.slane %v571_v11, 4  ;;  %v580_v58 = vadd.f32 %v579_v32, %v578_v33  ;;  %v588_v15 = vsel %vm541_vm0, %v536_v28, 0.0 }
 0x181   : >> { %v596_v12 = vsel %vm541_vm0, %v537_v37, 0.0  ;;  %v547_v3 = vrot.slane %v546_v60, 2  ;;  %v564_v24 = vadd.f32 %v563_v34, %v562_v10  ;;  %v589_v9 = vadd.f32 %v588_v15, %v587_v35 }
 0x182   : >> { %v556_v36 = vrot.slane %v555_v0, 2  ;;  %v573_v14 = vadd.f32 %v572_v38, %v571_v11  ;;  %v581_v7 = vrot.slane %v580_v58, 4  ;;  %v597_v39 = vsel %vm541_vm0, %v538_v30, 0.0 }
 0x183   : >> { %v605_v5 = vsel %vm541_vm0, %v539_v4, 0.0  ;;  %v548_v26 = vadd.f32 %v547_v3, %v546_v60  ;;  %v565_v61 = vrot.slane %v564_v24, 2  ;;  %v590_v22 = vrot.slane %v589_v9, 4 }
 0x184   : >> { %v557_v31 = vadd.f32 %v556_v36, %v555_v0  ;;  %v574_v40 = vrot.slane %v573_v14, 2  ;;  %v582_v28 = vadd.f32 %v581_v7, %v580_v58  ;;  %v598_v1 = vadd.f32 %v597_v39, %v596_v12 }
 0x185   : >> { %v606_v37 = vsel %vm541_vm0, %v540_v59, 0.0  ;;  %v549_v17 = vrot.slane %v548_v26, 1  ;;  %v566_v56 = vadd.f32 %v565_v61, %v564_v24  ;;  %v591_v23 = vadd.f32 %v590_v22, %v589_v9 }
 0x186   : >> { %v558_v19 = vrot.slane %v557_v31, 1  ;;  %v575_v20 = vadd.f32 %v574_v40, %v573_v14  ;;  %v583_v27 = vrot.slane %v582_v28, 2  ;;  %v599_v30 = vrot.slane %v598_v1, 4 }
 0x187   : >> { %v607_v62 = vadd.f32 %v606_v37, %v605_v5  ;;  %v550_v4 = vadd.f32 %v549_v17, %v548_v26  ;;  %v567_v6 = vrot.slane %v566_v56, 1  ;;  %v592_v10 = vrot.slane %v591_v23, 2 }
 0x188   : >> { %v559_v57 = vadd.f32 %v558_v19, %v557_v31  ;;  %v576_v29 = vrot.slane %v575_v20, 1  ;;  %v584_v11 = vadd.f32 %v583_v27, %v582_v28  ;;  %v600_v33 = vadd.f32 %v599_v30, %v598_v1 }
 0x189   : >> { %v608_v32 = vrot.slane %v607_v62, 4  ;;  %v568_v60 = vadd.f32 %v567_v6, %v566_v56  ;;  %v593_v0 = vadd.f32 %v592_v10, %v591_v23  ;;  %v752_v59 = vadd.f32 %v1719_v18, %v550_v4 }
 0x18a   : >> { %v753_v34 = vadd.f32 %v1723_v2, %v559_v57  ;;  %v577_v35 = vadd.f32 %v576_v29, %v575_v20  ;;  %v585_v38 = vrot.slane %v584_v11, 1  ;;  %v601_v58 = vrot.slane %v600_v33, 2 }
 0x18b   : >> { %v609_v15 = vadd.f32 %v608_v32, %v607_v62  ;;  %v750_v12 = vrot.slane %v1754_v8, 1  ;;  %v594_v3 = vrot.slane %v593_v0, 1  ;;  %v754_v36 = vadd.f32 %v1725_v13, %v568_v60 }
 0x18c   : >> { %v769_v24 = vsel %vm768_vm1, %v753_v34, %v752_v59  ;;  %v586_v9 = vadd.f32 %v585_v38, %v584_v11  ;;  %v602_v14 = vadd.f32 %v601_v58, %v600_v33  ;;  %v755_v39 = vadd.f32 %v1729_v16, %v577_v35 }
 0x18d   : >> { %v610_v7 = vrot.slane %v609_v15, 2  ;;  %v742_v18 = vadd.f32 %v741_v63, %v1727_v21  ;;  %v595_v2 = vadd.f32 %v594_v3, %v593_v0  ;;  %v771_v5 = vsel %vm770_vm2, %v754_v36, %v769_v24 }
 0x18e   : >> { %v603_v26 = vrot.slane %v602_v14, 1  ;;  %v756_v13 = vadd.f32 %v1731_v55, %v586_v9  ;;  %v773_v61 = vsel %vm772_vm3, %v755_v39, %v771_v5  ;;  %v751_v40 = vadd.f32 %v750_v12, %v1754_v8 }
 0x18f   : >> { %v611_v31 = vadd.f32 %v610_v7, %v609_v15  ;;  %v757_v22 = vadd.f32 %v1735_v25, %v595_v2 }
 0x190   : >> { %v604_v16 = vadd.f32 %v603_v26, %v602_v14  ;;  %v775_v1 = vsel %vm774_vm4, %v756_v13, %v773_v61 }
 0x191   : >> { %v612_v28 = vrot.slane %v611_v31, 1  ;;  %v777_v21 = vsel %vm776_vm5, %v757_v22, %v775_v1 }
 0x192   : >> { %v758_v37 = vadd.f32 %v742_v18, %v604_v16  ;;  %476 = sbr.rel (!%p473_p7) target bundleno = 224 (0xe0), region = 103 }
 0x193   : >> { %v613_v63 = vadd.f32 %v612_v28, %v611_v31 }
 0x194   : >> { %v779_v19 = vsel %vm778_vm6, %v758_v37, %v777_v21 }
 0x195   : >> { %v759_v17 = vadd.f32 %v751_v40, %v613_v63 }
 0x197   : >> { %v781_v56 = vsel %vm780_vm7, %v759_v17, %v779_v19 }
 0x198   : >> { %785 = vst.msk [vmem:[%s784_s22] sm:$0xff] %vm541_vm0, %v781_v56 }
 0x199 PF: > { %v1933_v25 = vlaneseq  ;;  %v789_v23 = vstv %s1493_s8  ;;  %vm792_vm8 = vcmask 64512   ;;  %v810_v42 = vld [vmem:[%s1486_s7] sm:$0xff]  ;;  %v1372_v43 = vmov 0.0   ;;  %s1080_s23 = sshll.u32 %s1356_s28, 7  ;;  %s920_s25 = sshll.u32 %s1597_s18, 4  ;;  %s921_s25 = int_to_ptr.vmem [resolvable:$true] %s920_s25 }
 0x19a   : > { %1089 = vmatprep.subr.mxu0 %v1372_v43  ;;  %vm1373_vm10 = vmmov 0   ;;  %s1801_s24 = scalar_lea.hbm %s1883_s6, %s1080_s23  ;;  %s892_s10 = scalar_lea.sflag [#allocation8], %s1501_s16 }
 0x19b   : > { %v788_v8 = vand.u32 127, %v1933_v25  ;;  %1091 = vmatprep.mubr.msk.f32.mxu0 %vm1373_vm10, %v1372_v43  ;;  %1090 = vmatpush3.msra.mxu0 %v810_v42  ;;  %s1248_s12 = scalar_lea.vmem %s921_s25, 128  ;;  %s1374_s15 = smov [#allocation7]  }
 0x19c   : > { %p1249_p8 = scmp.ne.s32.totalorder %s921_s25, %s1248_s12  ;;  %s1252_s19 = sshll.u32 %s1374_s15, 4  ;;  %s1253_s19 = int_to_ptr.vmem [resolvable:$false] %s1252_s19 }
 0x19d   : > { %vm790_vm9 = vcmp.lt.s32.totalorder %v788_v8, %v789_v23  ;;  %s1254_s17 = scalar_lea.vmem %s1253_s19, 256  ;;  %p1255_p12 = scmp.lt.s32.totalorder %s921_s25, %s1253_s19 }
 0x19e   : > { %p1250_p10 = pnand %p1249_p8, %p1454_p9  ;;  %p1256_p0 = scmp.lt.s32.totalorder %s1254_s17, %s1248_s12 }
 0x19f   : > { %v786_v55 = vld [vmem:[#allocation2] sm:$0xff] }
 0x1a0   : > { %v791_v20 = vsel %vm790_vm9, %v786_v55, -1000000.0  ;;  %p1251_p11 = pneg %p1250_p10  ;;  %p1257_p1 = por %p1256_p0, %p1255_p12 }
 0x1a1   : > { %v793_v27 = vsel %vm792_vm8, %v791_v20, -inf }
 0x1a2   : > { %794 = vmax.xlane.f32.xlu0 %v793_v27  ;;  %p1258_p2 = pnand %p1257_p1, %p1251_p11 }
 0x22f   : > { %v795_v30 = vpop.xlane.xlu0 %794 }
 0x230   : > { %v796_v62 = vsub.f32 %v791_v20, %v795_v30 }
 0x232   : > { %v797_v4 = vmul.f32 1.442695, %v796_v62 }
 0x234   : > { %1232 = vpow2.f32 %v797_v4 }
 0x23e   : > { %v1233_v57 = vpop.eup %1232 }
 0x23f   : > { %v799_v41 = vsel %vm792_vm8, %v1233_v57, 0.0 }
 0x240   : > { %800 = vadd.xlane.f32.xlu0 %v799_v41 }
 0x2cd   : > { %v801_v44 = vpop.xlane.xlu0 %800 }
 0x2ce   : > { %1234 = vrcp.f32 %v801_v44 }
 0x2d8   : > { %v1235_v45 = vpop.eup %1234 }
 0x2d9   : > { %v804_v46 = vmul.f32 %v1235_v45, %v801_v44 }
 0x2db   : > { %v805_v47 = vsub.f32 2.0, %v804_v46 }
 0x2dd   : > { %v806_v48 = vmul.f32 %v1235_v45, %v805_v47 }
 0x2df   : > { %v807_v49 = vmul.f32 %v1233_v57, %v806_v48 }
 0x2e1   : > { %808 = vst.msk [vmem:[%s1597_s18] sm:$0xff] %vm792_vm8, %v807_v49 }
 0x2e8   : > { %v809_v50 = vld [vmem:[%s1597_s18] sm:$0xff] }
 0x2e9   : > { %1092 = vmatmul.mubr.msk.f32.vlgmr.msra.gmra.mrb[0].mxu0 %vm792_vm8, %v809_v50 }
 0x2ea   : > { %1261 = shalt.err (!%p1258_p2)
}
 0x2eb   : > { %s1262_s18 = scalar_lea.hbm %s1801_s24, 128  ;;  %s1266_s22 = scalar_lea.hbm %s1883_s6, 256 }
 0x2ec   : > { %p1263_p3 = scmp.ne.s32.totalorder %s1801_s24, %s1262_s18  ;;  %p1267_p6 = scmp.lt.u32.totalorder %s1801_s24, %s1883_s6 }
 0x2ed   : > { %p1268_p7 = scmp.lt.u32.totalorder %s1266_s22, %s1262_s18  ;;  %p1270_p10 = scmp.lt.u32.totalorder %s1262_s18, %s1801_s24 }
 0x2ee   : > { %p1264_p4 = pnand %p1263_p3, %p1454_p9 }
 0x2ef   : > { %p1269_p8 = por %p1268_p7, %p1267_p6 }
 0x2f0   : > { %p1265_p5 = pneg %p1264_p4 }
 0x2f1   : > { %p1271_p11 = por %p1270_p10, %p1269_p8 }
 0x2f3   : > { %p1272_p12 = pnand %p1271_p11, %p1265_p5 }
 0x2f5   : > { %1275 = shalt.err (!%p1272_p12)
}
 0x2f6   : > { %1095 = dma.vmem_to_hbm [thread:$0]  (%p1454_p9), %s921_s25, 128, %s1801_s24, %s892_s10   ;;  %vm884_vm11 = vcmask 130048  }
 0x2f7   : > { %s906_s12 = sshll.u32 %s1593_s1, 4  ;;  %s1828_s17 = scalar_lea.hbm %s1882_s5, %s1080_s23  ;;  %s1830_s12 = int_to_ptr.vmem [resolvable:$true] %s906_s12 }
 0x2f8   : > { %s887_s18 = scalar_lea.sflag [#allocation6], %s1501_s16  ;;  %s1276_s20 = scalar_lea.vmem %s1830_s12, 128 }
 0x2f9   : > { %p1277_p0 = scmp.ne.s32.totalorder %s1830_s12, %s1276_s20  ;;  %s1375_s28 = smov [#allocation5]  }
 0x2fa   : > { %s1280_s24 = sshll.u32 %s1375_s28, 4  ;;  %s1281_s24 = int_to_ptr.vmem [resolvable:$false] %s1280_s24 }
 0x2fb   : > { %p1278_p1 = pnand %p1277_p0, %p1454_p9  ;;  %s1282_s25 = scalar_lea.vmem %s1281_s24, 256 }
 0x2fc   : > { %p1283_p3 = scmp.lt.s32.totalorder %s1830_s12, %s1281_s24  ;;  %p1284_p4 = scmp.lt.s32.totalorder %s1282_s25, %s1276_s20 }
 0x2fd   : > { %p1279_p2 = pneg %p1278_p1 }
 0x2fe   : > { %p1285_p5 = por %p1284_p4, %p1283_p3 }
 0x300   : > { %p1286_p6 = pnand %p1285_p5, %p1279_p2 }
 0x3bc   : > { %v880_v51 = vpop.f32.mrb[0].mxu0 }
 0x3bd   : > { %885 = vst.msk [vmem:[%s1593_s1] sm:$0xff] %vm884_vm11, %v880_v51  ;;  %v1093_v52 = vpop.f32.mrb[1].mxu0 }
 0x3be   : > { %1289 = shalt.err (!%p1286_p6)
}
 0x3bf   : > { %s1290_s16 = scalar_lea.hbm %s1828_s17, 128  ;;  %s1294_s10 = scalar_lea.hbm %s1882_s5, 256 }
 0x3c0   : > { %p1291_p7 = scmp.ne.s32.totalorder %s1828_s17, %s1290_s16  ;;  %p1295_p11 = scmp.lt.u32.totalorder %s1828_s17, %s1882_s5 }
 0x3c1   : > { %p1296_p12 = scmp.lt.u32.totalorder %s1294_s10, %s1290_s16  ;;  %p1298_p1 = scmp.lt.u32.totalorder %s1290_s16, %s1828_s17 }
 0x3c2   : > { %p1292_p8 = pnand %p1291_p7, %p1454_p9 }
 0x3c3   : > { %p1297_p0 = por %p1296_p12, %p1295_p11 }
 0x3c4   : > { %p1293_p10 = pneg %p1292_p8 }
 0x3c5   : > { %p1299_p2 = por %p1298_p1, %p1297_p0 }
 0x3c7   : > { %p1300_p3 = pnand %p1299_p2, %p1293_p10 }
 0x3c9   : > { %1303 = shalt.err (!%p1300_p3)
}
 0x3ca   : > { %1094 = dma.vmem_to_hbm [thread:$0]  (%p1454_p9), %s1830_s12, 128, %s1828_s17, %s887_s18  }
 0x3cb PF: > { %p1105_p4 = scmp.ge.s32.totalorder %s1364_s30, 2  ;;  %s932_s7 = sand.u32 1, %s1344_s26  }
 0x3cc   : > { %s933_s8 = scalar_lea.sflag [#allocation6], %s932_s7 }
 0x3cd   : > { %p1099_p5 = pnand %p1105_p4, %p1461_p13 }
 0x3cf   : > { %1335 = dma.done.wait (!%p1099_p5), %s933_s8, 128  }
 0x3d0   : > { %1337 = vsyncadd (!%p1099_p5), %s933_s8, 4294967168  ;;  %s942_s15 = scalar_lea.sflag [#allocation8], %s932_s7 }
 0x3d1   : > { %1339 = dma.done.wait (!%p1099_p5), %s942_s15, 128  }
 0x3d2   : > { %1341 = vsyncadd (!%p1099_p5), %s942_s15, 4294967168  ;;  %s29_s30 = sadd.s32 1, %s1364_s30   ;;  %s1934_s26 = smov %s1348_s0 }
 0x3d3   : > { %p26_p6 = scmp.ge.s32.totalorder %s29_s30, 4   ;;  %s1935_s0 = smov %s1352_s27 }
 0x3d4   : > { %s1936_s27 = smov %s1467_s14  ;;  %s1937_s28 = smov %s1360_s29 }
 0x3d5   : > { %s1938_s29 = smov %s1940_s9  ;;  %28 = sbr.rel (!%p26_p6) target bundleno = 21 (0x15), region = 114 }
 0x3dc   :  { %947 = vsyncpa [#allocation6], 1 }
 0x3dd   :  { %949 = vsyncpa [#allocation6 + $0x1], 1 }
 0x3de   :  { %950 = vsyncpa [#allocation8], 1 }
 0x3df   :  { %952 = vsyncpa [#allocation8 + $0x1], 1 }

</bundles_post_ra>
